<compile_context>
chip_gen: v7x
topology: tpu7x:2x2x1
jax: 0.10.0
libtpu: 0.0.40
codegen_flags: <defaults>
</compile_context>

<pallas_src>
import functools

import jax
import jax.numpy as jnp
from jax.experimental import pallas as pl
from jax.experimental.pallas import tpu as pltpu

LANE = 128  # lane width; pad feature dims to multiples of this


def mlp_kernel(x_ref, w1_ref, b1_ref, w2_ref, b2_ref, o_ref):
    # fc1: x @ W1^T + b1   (W1 pre-transposed & zero-padded to [D_in_p, H_p])
    h = jnp.dot(x_ref[...], w1_ref[...], preferred_element_type=jnp.float32)
    h = jax.nn.sigmoid(h + b1_ref[...])          # b1 is [1, H_p], broadcasts over batch
    # fc2: h @ W2^T + b2   (W2 pre-transposed & zero-padded to [H_p, D_out_p])
    y = jnp.dot(h, w2_ref[...], preferred_element_type=jnp.float32)
    o_ref[...] = jax.nn.sigmoid(y + b2_ref[...]).astype(o_ref.dtype)


def _round_up(n, m):
    return ((n + m - 1) // m) * m


@functools.partial(jax.jit, static_argnames=("tb",))
def mlp_forward(x, w1, b1, w2, b2, tb=128):
    """Forward pass of Net.

    x : [B, D_in]
    w1: [H, D_in]    (PyTorch fc1.weight layout [out, in])
    b1: [H]
    w2: [D_out, H]   (PyTorch fc2.weight layout)
    b2: [D_out]
    Returns [B, D_out].
    """
    B, D_in = x.shape
    H = w1.shape[0]
    D_out = w2.shape[0]

    # Lane-dense padded sizes.
    D_in_p = _round_up(D_in, LANE)
    H_p = _round_up(H, LANE)
    D_out_p = _round_up(D_out, LANE)
    B_p = _round_up(B, tb)

    # Transpose + zero-pad once (inside jit; XLA fuses these pads).
    x_p = jnp.zeros((B_p, D_in_p), x.dtype).at[:B, :D_in].set(x)
    w1_t = jnp.zeros((D_in_p, H_p), w1.dtype).at[:D_in, :H].set(w1.T)
    b1_p = jnp.zeros((1, H_p), b1.dtype).at[0, :H].set(b1)
    w2_t = jnp.zeros((H_p, D_out_p), w2.dtype).at[:H, :D_out].set(w2.T)
    b2_p = jnp.zeros((1, D_out_p), b2.dtype).at[0, :D_out].set(b2)

    grid = (B_p // tb,)

    out_p = pl.pallas_call(
        mlp_kernel,
        out_shape=jax.ShapeDtypeStruct((B_p, D_out_p), jnp.float32),
        grid_spec=pltpu.PrefetchScalarGridSpec(
            num_scalar_prefetch=0,
            grid=grid,
            in_specs=[
                # x tiles pipeline over the batch grid axis.
                pl.BlockSpec((tb, D_in_p), lambda i: (i, 0)),
                # Weights / biases: constant block index -> stay resident in VMEM.
                pl.BlockSpec((D_in_p, H_p), lambda i: (0, 0)),
                pl.BlockSpec((1, H_p), lambda i: (0, 0)),
                pl.BlockSpec((H_p, D_out_p), lambda i: (0, 0)),
                pl.BlockSpec((1, D_out_p), lambda i: (0, 0)),
            ],
            out_specs=pl.BlockSpec((tb, D_out_p), lambda i: (i, 0)),
        ),
        compiler_params=pltpu.CompilerParams(
            # Batch tiles are independent -> megacore-parallel on v7x.
            dimension_semantics=("parallel",),
        ),
    )(x_p, w1_t, b1_p, w2_t, b2_p)

    # Drop the batch / output-column padding.
    return out_p[:B, :D_out]


if __name__ == "__main__":
    # Module config: Net(D_in, H, D_out). Batch is raised so the batch grid
    # actually pipelines (perf feedback); features stay at the module's sizes.
    D_in, H, D_out = 32, 64, 16
    B = 512

    key = jax.random.PRNGKey(0)
    kx, kw1, kw2 = jax.random.split(key, 3)

    x = jax.random.normal(kx, (B, D_in), dtype=jnp.float32)

    # init.normal(weight) -> standard normal; init.constant(bias, 0.0) -> zeros.
    w1 = jax.random.normal(kw1, (H, D_in), dtype=jnp.float32)   # fc1.weight [out, in]
    b1 = jnp.zeros((H,), dtype=jnp.float32)                     # fc1.bias
    w2 = jax.random.normal(kw2, (D_out, H), dtype=jnp.float32)  # fc2.weight [out, in]
    b2 = jnp.zeros((D_out,), dtype=jnp.float32)                 # fc2.bias

    out = mlp_forward(x, w1, b1, w2, b2)
    out = jax.block_until_ready(out)

    # Pure-JAX reference of the same forward pass.
    ref = jax.nn.sigmoid(jax.nn.sigmoid(x @ w1.T + b1) @ w2.T + b2)
    assert out.shape == (B, D_out)
    assert jnp.allclose(out, ref, atol=1e-5, rtol=1e-5)

    print("KERNEL_OK")
</pallas_src>

<mosaic_0001>
module attributes {stable_mosaic.version = 11 : i64} {
  func.func @mlp_kernel(%arg0: i32, %arg1: memref<128x128xf32, #tpu.memory_space<vmem>>, %arg2: memref<128x128xf32, #tpu.memory_space<vmem>>, %arg3: memref<1x128xf32, #tpu.memory_space<vmem>>, %arg4: memref<128x128xf32, #tpu.memory_space<vmem>>, %arg5: memref<1x128xf32, #tpu.memory_space<vmem>>, %arg6: memref<128x128xf32, #tpu.memory_space<vmem>>) attributes {dimension_semantics = [#tpu.dimension_semantics<parallel>], iteration_bounds = array<i64: 4>, scalar_prefetch = 0 : i64, scratch_operands = 0 : i64, tpu.core_type = #tpu.core_type<tc>, window_params = [{transform_indices = @transform_0, window_bounds = array<i64: 128, 128>}, {pipeline_mode = #tpu.pipeline_mode<synchronous>, transform_indices = @transform_1, window_bounds = array<i64: 128, 128>}, {pipeline_mode = #tpu.pipeline_mode<synchronous>, transform_indices = @transform_2, window_bounds = array<i64: 1, 128>}, {pipeline_mode = #tpu.pipeline_mode<synchronous>, transform_indices = @transform_3, window_bounds = array<i64: 128, 128>}, {pipeline_mode = #tpu.pipeline_mode<synchronous>, transform_indices = @transform_4, window_bounds = array<i64: 1, 128>}, {transform_indices = @transform_5, window_bounds = array<i64: 128, 128>}]} {
    %c0 = arith.constant 0 : index
    %c0_0 = arith.constant 0 : index
    %0 = vector.load %arg1[%c0, %c0_0] : memref<128x128xf32, #tpu.memory_space<vmem>>, vector<128x128xf32>
    %c0_1 = arith.constant 0 : index
    %c0_2 = arith.constant 0 : index
    %1 = vector.load %arg2[%c0_1, %c0_2] : memref<128x128xf32, #tpu.memory_space<vmem>>, vector<128x128xf32>
    %cst = arith.constant dense<0.000000e+00> : vector<128x128xf32>
    %2 = tpu.matmul %0, %1, %cst {dimension_numbers = #tpu.dot_dimension_numbers<[1], [0], [0], [1], [0, 0, 1, 1], [], []>} : vector<128x128xf32>, vector<128x128xf32>, vector<128x128xf32> -> vector<128x128xf32>
    %c0_3 = arith.constant 0 : index
    %c0_4 = arith.constant 0 : index
    %3 = vector.load %arg3[%c0_3, %c0_4] : memref<1x128xf32, #tpu.memory_space<vmem>>, vector<1x128xf32>
    %4 = vector.broadcast %3 : vector<1x128xf32> to vector<128x128xf32>
    %5 = arith.addf %2, %4 : vector<128x128xf32>
    %6 = arith.negf %5 : vector<128x128xf32>
    %7 = math.exp %6 : vector<128x128xf32>
    %cst_5 = arith.constant 1.000000e+00 : f32
    %8 = vector.broadcast %cst_5 : f32 to vector<128x128xf32>
    %9 = arith.addf %8, %7 : vector<128x128xf32>
    %10 = arith.divf %8, %9 : vector<128x128xf32>
    %c0_6 = arith.constant 0 : index
    %c0_7 = arith.constant 0 : index
    %11 = vector.load %arg4[%c0_6, %c0_7] : memref<128x128xf32, #tpu.memory_space<vmem>>, vector<128x128xf32>
    %cst_8 = arith.constant dense<0.000000e+00> : vector<128x128xf32>
    %12 = tpu.matmul %10, %11, %cst_8 {dimension_numbers = #tpu.dot_dimension_numbers<[1], [0], [0], [1], [0, 0, 1, 1], [], []>} : vector<128x128xf32>, vector<128x128xf32>, vector<128x128xf32> -> vector<128x128xf32>
    %c0_9 = arith.constant 0 : index
    %c0_10 = arith.constant 0 : index
    %13 = vector.load %arg5[%c0_9, %c0_10] : memref<1x128xf32, #tpu.memory_space<vmem>>, vector<1x128xf32>
    %14 = vector.broadcast %13 : vector<1x128xf32> to vector<128x128xf32>
    %15 = arith.addf %12, %14 : vector<128x128xf32>
    %16 = arith.negf %15 : vector<128x128xf32>
    %17 = math.exp %16 : vector<128x128xf32>
    %cst_11 = arith.constant 1.000000e+00 : f32
    %18 = vector.broadcast %cst_11 : f32 to vector<128x128xf32>
    %19 = arith.addf %18, %17 : vector<128x128xf32>
    %20 = arith.divf %18, %19 : vector<128x128xf32>
    %c0_12 = arith.constant 0 : index
    %c0_13 = arith.constant 0 : index
    %21 = vector.load %arg6[%c0_12, %c0_13] : memref<128x128xf32, #tpu.memory_space<vmem>>, vector<128x128xf32>
    tpu.vector_store %arg6[%c0_12, %c0_13], %20 {strides = array<i32>} : memref<128x128xf32, #tpu.memory_space<vmem>>, vector<128x128xf32>,
    return
  }
  func.func @transform_0(%arg0: i32) -> (i32, i32) {
    %c0_i32 = arith.constant 0 : i32
    %c0_i32_0 = arith.constant 0 : i32
    return %arg0, %c0_i32 : i32, i32
  }
  func.func @transform_1(%arg0: i32) -> (i32, i32) {
    %c0_i32 = arith.constant 0 : i32
    %c0_i32_0 = arith.constant 0 : i32
    %c0_i32_1 = arith.constant 0 : i32
    return %c0_i32, %c0_i32_0 : i32, i32
  }
  func.func @transform_2(%arg0: i32) -> (i32, i32) {
    %c0_i32 = arith.constant 0 : i32
    %c0_i32_0 = arith.constant 0 : i32
    %c0_i32_1 = arith.constant 0 : i32
    return %c0_i32, %c0_i32_0 : i32, i32
  }
  func.func @transform_3(%arg0: i32) -> (i32, i32) {
    %c0_i32 = arith.constant 0 : i32
    %c0_i32_0 = arith.constant 0 : i32
    %c0_i32_1 = arith.constant 0 : i32
    return %c0_i32, %c0_i32_0 : i32, i32
  }
  func.func @transform_4(%arg0: i32) -> (i32, i32) {
    %c0_i32 = arith.constant 0 : i32
    %c0_i32_0 = arith.constant 0 : i32
    %c0_i32_1 = arith.constant 0 : i32
    return %c0_i32, %c0_i32_0 : i32, i32
  }
  func.func @transform_5(%arg0: i32) -> (i32, i32) {
    %c0_i32 = arith.constant 0 : i32
    %c0_i32_0 = arith.constant 0 : i32
    return %arg0, %c0_i32 : i32, i32
  }
}

</mosaic_0001>

<bundles_post_ra>
// kernel: mlp_forward.1
= control target key start
LH: loop header
LB: loop body
LE: loop exit
PB: predicated region body
PF: predicated region fallthrough
CT: control target
= control target key end

     0   :  { %s1303_s18 = smov 0   ;;  %s1501_s0 = inlined_call_operand.vmem [shape: f32[512,128], index: 0, kind: input, shape index: {}]   ;;  %s1502_s1 = inlined_call_operand.vmem [shape: f32[128,128], index: 1, kind: input, shape index: {}]   ;;  %s1503_s2 = inlined_call_operand.vmem [shape: f32[1,128], index: 2, kind: input, shape index: {}]   ;;  %s1504_s3 = inlined_call_operand.vmem [shape: f32[128,128], index: 3, kind: input, shape index: {}]   ;;  %s1505_s4 = inlined_call_operand.vmem [shape: f32[1,128], index: 4, kind: input, shape index: {}]   ;;  %s1506_s5 = inlined_call_operand.vmem [shape: f32[512,128], index: 5, kind: output, shape index: {}]  }
   0x1 LB: > { %s844_s19 = sadd.s32 4294967295, %s1271_s18   ;;  %p848_p0 = scmp.ge.s32.totalorder %s1271_s18, 1  ;;  %s1271_s18 = sphi %s1303_s18, %s15_s18  }
   0x2   : > { %p188_p1 = scmp.lt.s32.totalorder %s1271_s18, 5 }
   0x4   : > { %p189_p2 = pnand %p848_p0, %p188_p1 }
   0x5   : > { %v244_v0 = vld [vmem:[%s1502_s1] sm:$0xff] (!%p189_p2)  ;;  %v245_v1 = vld [vmem:[%s1502_s1 + $0x8] sm:$0xff] (!%p189_p2)  ;;  %v246_v2 = vld [vmem:[%s1502_s1 + $0x10] sm:$0xff] (!%p189_p2)  ;;  %s849_s26 = sshll.u32 (!%p189_p2), %s844_s19, 4 }
   0x6   : > { %192 = sbr.rel (%p189_p2) target bundleno = 554 (0x22a), region = 40  ;;  %v1065_v3 = vpack.c.bf16 (!%p189_p2), %v245_v1, %v244_v0  ;;  %v247_v4 = vld [vmem:[%s1502_s1 + $0x18] sm:$0xff] (!%p189_p2)  ;;  %p217_p3 = scmp.lt.s32.totalorder (!%p189_p2), %s849_s26, 63  ;;  %v248_v6 = vld [vmem:[%s1502_s1 + $0x20] sm:$0xff] (!%p189_p2)  ;;  %v249_v7 = vld [vmem:[%s1502_s1 + $0x28] sm:$0xff] (!%p189_p2) }
   0x7   : > { %v1069_v5 = vpack.c.bf16 (!%p189_p2), %v247_v4, %v246_v2  ;;  %v1073_v8 = vpack.c.bf16 (!%p189_p2), %v249_v7, %v248_v6  ;;  %v508_v9 = vld [vmem:[%s1504_s3] sm:$0xff] (!%p189_p2)  ;;  %v509_v10 = vld [vmem:[%s1504_s3 + $0x8] sm:$0xff] (!%p189_p2)  ;;  %v250_v11 = vld [vmem:[%s1502_s1 + $0x30] sm:$0xff] (!%p189_p2) }
   0x8   : > { %1066 = vmatprep.subr.bf16.mxu0 (!%p189_p2), %v1065_v3  ;;  %v251_v12 = vld [vmem:[%s1502_s1 + $0x38] sm:$0xff] (!%p189_p2)  ;;  %v1097_v13 = vpack.c.bf16 (!%p189_p2), %v509_v10, %v508_v9  ;;  %v252_v16 = vld [vmem:[%s1502_s1 + $0x40] sm:$0xff] (!%p189_p2)  ;;  %v253_v17 = vld [vmem:[%s1502_s1 + $0x48] sm:$0xff] (!%p189_p2) }
   0x9   : > { %1068 = vmatpush3.bf16.msra.mxu0 (!%p189_p2), %v1065_v3  ;;  %v1077_v15 = vpack.c.bf16 (!%p189_p2), %v251_v12, %v250_v11  ;;  %v1081_v18 = vpack.c.bf16 (!%p189_p2), %v253_v17, %v252_v16  ;;  %v254_v19 = vld [vmem:[%s1502_s1 + $0x50] sm:$0xff] (!%p189_p2)  ;;  %v255_v20 = vld [vmem:[%s1502_s1 + $0x58] sm:$0xff] (!%p189_p2)  ;;  %v256_v22 = vld [vmem:[%s1502_s1 + $0x60] sm:$0xff] (!%p189_p2) }
   0xa   : > { %1070 = vmatprep.subr.bf16.mxu0 (!%p189_p2), %v1069_v5  ;;  %1098 = vmatprep.subr.bf16.mxu1 (!%p189_p2), %v1097_v13  ;;  %v1085_v21 = vpack.c.bf16 (!%p189_p2), %v255_v20, %v254_v19  ;;  %v257_v23 = vld [vmem:[%s1502_s1 + $0x68] sm:$0xff] (!%p189_p2)  ;;  %v258_v25 = vld [vmem:[%s1502_s1 + $0x70] sm:$0xff] (!%p189_p2)  ;;  %v259_v26 = vld [vmem:[%s1502_s1 + $0x78] sm:$0xff] (!%p189_p2) }
   0xb   : > { %1100 = vmatpush3.bf16.msra.mxu1 (!%p189_p2), %v1097_v13  ;;  %v1089_v24 = vpack.c.bf16 (!%p189_p2), %v257_v23, %v256_v22  ;;  %v1093_v27 = vpack.c.bf16 (!%p189_p2), %v259_v26, %v258_v25  ;;  %v510_v43 = vld [vmem:[%s1504_s3 + $0x10] sm:$0xff] (!%p189_p2)  ;;  %v511_v44 = vld [vmem:[%s1504_s3 + $0x18] sm:$0xff] (!%p189_p2)  ;;  %v512_v46 = vld [vmem:[%s1504_s3 + $0x20] sm:$0xff] (!%p189_p2) }
   0xc   : > { %v1101_v45 = vpack.c.bf16 (!%p189_p2), %v511_v44, %v510_v43  ;;  %v513_v47 = vld [vmem:[%s1504_s3 + $0x28] sm:$0xff] (!%p189_p2)  ;;  %v514_v49 = vld [vmem:[%s1504_s3 + $0x30] sm:$0xff] (!%p189_p2)  ;;  %v515_v50 = vld [vmem:[%s1504_s3 + $0x38] sm:$0xff] (!%p189_p2) }
   0xd   : > { %s1508_s26 = smov (!%p217_p3, %s849_s26), 63  ;;  %1072 = vmatpush3.bf16.msra.mxu0 %v1069_v5  ;;  %v1105_v48 = vpack.c.bf16 %v513_v47, %v512_v46  ;;  %v1109_v51 = vpack.c.bf16 %v515_v50, %v514_v49  ;;  %v516_v52 = vld [vmem:[%s1504_s3 + $0x40] sm:$0xff]  ;;  %v517_v53 = vld [vmem:[%s1504_s3 + $0x48] sm:$0xff]  ;;  %v518_v55 = vld [vmem:[%s1504_s3 + $0x50] sm:$0xff] }
   0xe   : > { %s850_s8 = sshll.u32 %s1508_s26, 3  ;;  %1074 = vmatprep.subr.bf16.mxu0 %v1073_v8  ;;  %1102 = vmatprep.subr.bf16.mxu1 %v1101_v45  ;;  %v1113_v54 = vpack.c.bf16 %v517_v53, %v516_v52  ;;  %v519_v56 = vld [vmem:[%s1504_s3 + $0x58] sm:$0xff]  ;;  %v520_v58 = vld [vmem:[%s1504_s3 + $0x60] sm:$0xff]  ;;  %v521_v59 = vld [vmem:[%s1504_s3 + $0x68] sm:$0xff] }
   0xf   : > { %s1349_s20 = scalar_lea.vmem %s1501_s0, %s850_s8  ;;  %1104 = vmatpush3.bf16.msra.mxu1 %v1101_v45  ;;  %v1117_v57 = vpack.c.bf16 %v519_v56, %v518_v55  ;;  %v1121_v60 = vpack.c.bf16 %v521_v59, %v520_v58  ;;  %v522_v61 = vld [vmem:[%s1504_s3 + $0x70] sm:$0xff]  ;;  %v523_v62 = vld [vmem:[%s1504_s3 + $0x78] sm:$0xff]  ;;  %v1436_v0 = vld [vmem:[%s1503_s2] ss:$0 sm:$0xff]  ;;  %s1476_s28 = scalar_lea.vmem %s1506_s5, %s850_s8 }
  0x10   : > { %v228_v14 = vld [vmem:[%s1349_s20] sm:$0xff]  ;;  %v229_v28 = vld [vmem:[%s1349_s20 + $0x8] sm:$0xff]  ;;  %v230_v29 = vld [vmem:[%s1349_s20 + $0x10] sm:$0xff]  ;;  %1106 = vmatprep.subr.bf16.mxu1 %v1105_v48  ;;  %v1125_v63 = vpack.c.bf16 %v523_v62, %v522_v61 }
  0x11   : > { %985 = vmatprep.mubr.f32.mxu0 %v228_v14  ;;  %1076 = vmatpush3.bf16.msra.mxu0 %v1073_v8  ;;  %v231_v30 = vld [vmem:[%s1349_s20 + $0x18] sm:$0xff]  ;;  %v232_v31 = vld [vmem:[%s1349_s20 + $0x20] sm:$0xff]  ;;  %v233_v32 = vld [vmem:[%s1349_s20 + $0x28] sm:$0xff] }
  0x12   : > { %1078 = vmatprep.subr.bf16.mxu0 %v1077_v15  ;;  %v234_v33 = vld [vmem:[%s1349_s20 + $0x30] sm:$0xff]  ;;  %v235_v34 = vld [vmem:[%s1349_s20 + $0x38] sm:$0xff]  ;;  %v236_v35 = vld [vmem:[%s1349_s20 + $0x40] sm:$0xff] }
  0x13   : > { %v237_v36 = vld [vmem:[%s1349_s20 + $0x48] sm:$0xff]  ;;  %v238_v37 = vld [vmem:[%s1349_s20 + $0x50] sm:$0xff]  ;;  %v239_v38 = vld [vmem:[%s1349_s20 + $0x58] sm:$0xff]  ;;  %1108 = vmatpush3.bf16.msra.mxu1 %v1105_v48 }
  0x14   : > { %v240_v39 = vld [vmem:[%s1349_s20 + $0x60] sm:$0xff]  ;;  %v241_v40 = vld [vmem:[%s1349_s20 + $0x68] sm:$0xff]  ;;  %v242_v41 = vld [vmem:[%s1349_s20 + $0x70] sm:$0xff]  ;;  %1110 = vmatprep.subr.bf16.mxu1 %v1109_v51 }
  0x15   : > { %1080 = vmatpush3.bf16.msra.mxu0 %v1077_v15  ;;  %v243_v42 = vld [vmem:[%s1349_s20 + $0x78] sm:$0xff] }
  0x16   : > { %1082 = vmatprep.subr.bf16.mxu0 %v1081_v18 }
  0x17   : > { %1112 = vmatpush3.bf16.msra.mxu1 %v1109_v51 }
  0x18   : > { %1114 = vmatprep.subr.bf16.mxu1 %v1113_v54 }
  0x19   : > { %1084 = vmatpush3.bf16.msra.mxu0 %v1081_v18 }
  0x1a   : > { %1086 = vmatprep.subr.bf16.mxu0 %v1085_v21 }
  0x1b   : > { %1116 = vmatpush3.bf16.msra.mxu1 %v1113_v54 }
  0x1c   : > { %1118 = vmatprep.subr.bf16.mxu1 %v1117_v57 }
  0x1d   : > { %1088 = vmatpush3.bf16.msra.mxu0 %v1085_v21 }
  0x1e   : > { %1090 = vmatprep.subr.bf16.mxu0 %v1089_v24 }
  0x1f   : > { %1120 = vmatpush3.bf16.msra.mxu1 %v1117_v57 }
  0x20   : > { %1122 = vmatprep.subr.bf16.mxu1 %v1121_v60 }
  0x21   : > { %1092 = vmatpush3.bf16.msra.mxu0 %v1089_v24 }
  0x22   : > { %1094 = vmatprep.subr.bf16.mxu0 %v1093_v27 }
  0x23   : > { %1124 = vmatpush3.bf16.msra.mxu1 %v1121_v60 }
  0x24   : > { %1126 = vmatprep.subr.bf16.mxu1 %v1125_v63 }
  0x25   : > { %1096 = vmatpush3.bf16.msra.mxu0 %v1093_v27 }
  0x27   : > { %1128 = vmatpush3.bf16.msra.mxu1 %v1125_v63 }
  0x28   : > { %986 = vmatmul.mubr.f32.vlgmr.msra.gmra.mrb[0].mxu0 %v229_v28 }
  0x29   : > { %988 = vmatprep.mubr.f32.mxu0 %v230_v29 }
  0x2c   : > { %989 = vmatmul.mubr.f32.gmra.mrb[2].mxu0 %v231_v30 }
  0x2d   : > { %991 = vmatprep.mubr.f32.mxu0 %v232_v31 }
  0x30   : > { %992 = vmatmul.mubr.f32.gmra.mrb[4].mxu0 %v233_v32 }
  0x31   : > { %994 = vmatprep.mubr.f32.mxu0 %v234_v33 }
  0x34   : > { %995 = vmatmul.mubr.f32.gmra.mrb[6].mxu0 %v235_v34 }
  0x35   : > { %997 = vmatprep.mubr.f32.mxu0 %v236_v35 }
  0x38   : > { %998 = vmatmul.mubr.f32.gmra.mrb[8].mxu0 %v237_v36 }
  0x39   : > { %1000 = vmatprep.mubr.f32.mxu0 %v238_v37 }
  0x3c   : > { %1001 = vmatmul.mubr.f32.gmra.mrb[10].mxu0 %v239_v38 }
  0x3d   : > { %1003 = vmatprep.mubr.f32.mxu0 %v240_v39 }
  0x40   : > { %1004 = vmatmul.mubr.f32.gmra.mrb[12].mxu0 %v241_v40 }
  0x41   : > { %1006 = vmatprep.mubr.f32.mxu0 %v242_v41 }
  0x44   : > { %1007 = vmatmul.mubr.f32.gmra.mrb[14].mxu0 %v243_v42 }
  0xfb   : > { %v987_v1 = vpop.f32.mrb[0].mxu0 }
  0xfc   : > { %v339_v2 = vadd.f32 %v987_v1, %v1436_v0  ;;  %v333_v3 = vpop.f32.mrb[1].mxu0 }
  0xfd   : > { %v334_v4 = vadd.f32 %v1436_v0, %v333_v3 }
  0xfe   : > { %v855_v5 = vmul.f32 -1.442695, %v339_v2 }
  0xff   : > { %v854_v6 = vmul.f32 -1.442695, %v334_v4  ;;  %v990_v7 = vpop.f32.mrb[2].mxu0 }
 0x100   : > { %1137 = vpow2.f32 %v855_v5  ;;  %v349_v8 = vadd.f32 %v990_v7, %v1436_v0  ;;  %v343_v9 = vpop.f32.mrb[3].mxu0 }
 0x101   : > { %1139 = vpow2.f32 %v854_v6  ;;  %v344_v10 = vadd.f32 %v1436_v0, %v343_v9 }
 0x102   : > { %v857_v11 = vmul.f32 -1.442695, %v349_v8 }
 0x103   : > { %v856_v12 = vmul.f32 -1.442695, %v344_v10  ;;  %v993_v13 = vpop.f32.mrb[4].mxu0 }
 0x104   : > { %1141 = vpow2.f32 %v857_v11  ;;  %v359_v14 = vadd.f32 %v993_v13, %v1436_v0  ;;  %v353_v15 = vpop.f32.mrb[5].mxu0 }
 0x105   : > { %1143 = vpow2.f32 %v856_v12  ;;  %v354_v16 = vadd.f32 %v1436_v0, %v353_v15 }
 0x106   : > { %v859_v17 = vmul.f32 -1.442695, %v359_v14 }
 0x107   : > { %v858_v18 = vmul.f32 -1.442695, %v354_v16  ;;  %v996_v19 = vpop.f32.mrb[6].mxu0 }
 0x108   : > { %1145 = vpow2.f32 %v859_v17  ;;  %v369_v20 = vadd.f32 %v996_v19, %v1436_v0  ;;  %v363_v21 = vpop.f32.mrb[7].mxu0 }
 0x109   : > { %1147 = vpow2.f32 %v858_v18  ;;  %v364_v22 = vadd.f32 %v1436_v0, %v363_v21 }
 0x10a   : > { %v1138_v23 = vpop.eup %1137  ;;  %v861_v24 = vmul.f32 -1.442695, %v369_v20 }
 0x10b   : > { %v1140_v25 = vpop.eup %1139  ;;  %v461_v26 = vadd.f32 1.0, %v1138_v23  ;;  %v860_v27 = vmul.f32 -1.442695, %v364_v22  ;;  %v999_v28 = vpop.f32.mrb[8].mxu0 }
 0x10c   : > { %1149 = vpow2.f32 %v861_v24  ;;  %v379_v29 = vadd.f32 %v999_v28, %v1436_v0  ;;  %v373_v30 = vpop.f32.mrb[9].mxu0  ;;  %v460_v31 = vadd.f32 1.0, %v1140_v25 }
 0x10d   : > { %1151 = vrcp.f32 %v461_v26  ;;  %v374_v32 = vadd.f32 %v1436_v0, %v373_v30 }
 0x10e   : > { %v1142_v33 = vpop.eup %1141  ;;  %1153 = vpow2.f32 %v860_v27  ;;  %v863_v34 = vmul.f32 -1.442695, %v379_v29 }
 0x10f   : > { %v1144_v35 = vpop.eup %1143  ;;  %v463_v36 = vadd.f32 1.0, %v1142_v33  ;;  %v862_v37 = vmul.f32 -1.442695, %v374_v32  ;;  %v1002_v38 = vpop.f32.mrb[10].mxu0  ;;  %1155 = vrcp.f32 %v460_v31  ;;  %v1457_v33 = vld [vmem:[%s1505_s4] ss:$0 sm:$0xff] }
 0x110   : > { %v462_v39 = vadd.f32 1.0, %v1144_v35  ;;  %1157 = vpow2.f32 %v863_v34  ;;  %v389_v40 = vadd.f32 %v1002_v38, %v1436_v0  ;;  %v383_v41 = vpop.f32.mrb[11].mxu0 }
 0x111   : > { %1159 = vrcp.f32 %v463_v36  ;;  %v384_v42 = vadd.f32 %v1436_v0, %v383_v41 }
 0x112   : > { %v1146_v43 = vpop.eup %1145  ;;  %1161 = vrcp.f32 %v462_v39  ;;  %v865_v44 = vmul.f32 -1.442695, %v389_v40 }
 0x113   : > { %v1148_v45 = vpop.eup %1147  ;;  %v465_v46 = vadd.f32 1.0, %v1146_v43  ;;  %1163 = vpow2.f32 %v862_v37  ;;  %v864_v47 = vmul.f32 -1.442695, %v384_v42  ;;  %v1005_v48 = vpop.f32.mrb[12].mxu0 }
 0x114   : > { %v464_v49 = vadd.f32 1.0, %v1148_v45  ;;  %1165 = vpow2.f32 %v865_v44  ;;  %v399_v50 = vadd.f32 %v1005_v48, %v1436_v0  ;;  %v393_v51 = vpop.f32.mrb[13].mxu0 }
 0x115   : > { %1167 = vrcp.f32 %v465_v46  ;;  %v394_v52 = vadd.f32 %v1436_v0, %v393_v51 }
 0x116   : > { %v1150_v53 = vpop.eup %1149  ;;  %1169 = vrcp.f32 %v464_v49  ;;  %v867_v54 = vmul.f32 -1.442695, %v399_v50 }
 0x117   : > { %v1152_v55 = vpop.eup %1151  ;;  %v467_v56 = vadd.f32 1.0, %v1150_v53  ;;  %1171 = vpow2.f32 %v864_v47  ;;  %v866_v57 = vmul.f32 -1.442695, %v394_v52  ;;  %v1008_v58 = vpop.f32.mrb[14].mxu0 }
 0x118   : > { %v1154_v59 = vpop.eup %1153  ;;  %1173 = vpow2.f32 %v867_v54  ;;  %v409_v60 = vadd.f32 %v1008_v58, %v1436_v0  ;;  %v403_v61 = vpop.f32.mrb[15].mxu0 }
 0x119   : > { %v1156_v62 = vpop.eup %1155  ;;  %1175 = vrcp.f32 %v467_v56  ;;  %v466_v63 = vadd.f32 1.0, %v1154_v59  ;;  %v404_v1 = vadd.f32 %v1436_v0, %v403_v61 }
 0x11a   : > { %v1158_v2 = vpop.eup %1157  ;;  %1177 = vpow2.f32 %v866_v57  ;;  %v869_v3 = vmul.f32 -1.442695, %v409_v60  ;;  %1041 = vmatprep.mubr.f32.mxu1 %v1156_v62 }
 0x11b   : > { %v1160_v4 = vpop.eup %1159  ;;  %1179 = vrcp.f32 %v466_v63  ;;  %v868_v5 = vmul.f32 -1.442695, %v404_v1  ;;  %1042 = vmatmul.mubr.f32.vlgmr.msra.gmra.mrb[0].mxu1 %v1152_v55  ;;  %v469_v8 = vadd.f32 1.0, %v1158_v2 }
 0x11c   : > { %v1162_v6 = vpop.eup %1161  ;;  %1181 = vpow2.f32 %v869_v3 }
 0x11d   : > { %v1164_v7 = vpop.eup %1163  ;;  %1044 = vmatprep.mubr.f32.mxu1 %v1162_v6  ;;  %1183 = vpow2.f32 %v868_v5 }
 0x11e   : > { %v1166_v9 = vpop.eup %1165  ;;  %v468_v10 = vadd.f32 1.0, %v1164_v7 }
 0x11f   : > { %v1168_v11 = vpop.eup %1167  ;;  %1045 = vmatmul.mubr.f32.gmra.mrb[2].mxu1 %v1160_v4  ;;  %v471_v13 = vadd.f32 1.0, %v1166_v9 }
 0x120   : > { %v1170_v12 = vpop.eup %1169  ;;  %1185 = vrcp.f32 %v468_v10 }
 0x121   : > { %v1172_v0 = vpop.eup %1171  ;;  %1187 = vrcp.f32 %v469_v8  ;;  %1047 = vmatprep.mubr.f32.mxu1 %v1170_v12 }
 0x122   : > { %v1174_v14 = vpop.eup %1173  ;;  %v470_v15 = vadd.f32 1.0, %v1172_v0 }
 0x123   : > { %v1176_v16 = vpop.eup %1175  ;;  %1048 = vmatmul.mubr.f32.gmra.mrb[4].mxu1 %v1168_v11  ;;  %v473_v19 = vadd.f32 1.0, %v1174_v14 }
 0x124   : > { %v1178_v17 = vpop.eup %1177  ;;  %1189 = vrcp.f32 %v470_v15 }
 0x125   : > { %v1180_v18 = vpop.eup %1179  ;;  %1191 = vrcp.f32 %v471_v13  ;;  %v472_v20 = vadd.f32 1.0, %v1178_v17 }
 0x126   : > { %v1182_v21 = vpop.eup %1181  ;;  %1050 = vmatprep.mubr.f32.mxu1 %v1180_v18 }
 0x127   : > { %1193 = vrcp.f32 %v472_v20  ;;  %1051 = vmatmul.mubr.f32.gmra.mrb[6].mxu1 %v1176_v16  ;;  %v1184_v22 = vpop.eup %1183  ;;  %v475_v23 = vadd.f32 1.0, %v1182_v21 }
 0x128   : > { %1195 = vrcp.f32 %v473_v19  ;;  %v474_v24 = vadd.f32 1.0, %v1184_v22 }
 0x12a   : > { %v1186_v25 = vpop.eup %1185  ;;  %1197 = vrcp.f32 %v474_v24 }
 0x12b   : > { %v1188_v26 = vpop.eup %1187  ;;  %1053 = vmatprep.mubr.f32.mxu1 %v1186_v25  ;;  %1199 = vrcp.f32 %v475_v23 }
 0x12c   : > { %1054 = vmatmul.mubr.f32.gmra.mrb[8].mxu1 %v1188_v26 }
 0x12e   : > { %v1190_v27 = vpop.eup %1189 }
 0x12f   : > { %v1192_v28 = vpop.eup %1191  ;;  %1056 = vmatprep.mubr.f32.mxu1 %v1190_v27 }
 0x130   : > { %1057 = vmatmul.mubr.f32.gmra.mrb[10].mxu1 %v1192_v28 }
 0x131   : > { %v1194_v29 = vpop.eup %1193 }
 0x132   : > { %1059 = vmatprep.mubr.f32.mxu1 %v1194_v29  ;;  %v1196_v30 = vpop.eup %1195 }
 0x134   : > { %1060 = vmatmul.mubr.f32.gmra.mrb[12].mxu1 %v1196_v30  ;;  %v1198_v31 = vpop.eup %1197 }
 0x135   : > { %1062 = vmatprep.mubr.f32.mxu1 %v1198_v31  ;;  %v1200_v32 = vpop.eup %1199 }
 0x138   : > { %1063 = vmatmul.mubr.f32.gmra.mrb[14].mxu1 %v1200_v32 }
 0x1ee   : > { %v1043_v34 = vpop.f32.mrb[0].mxu1 }
 0x1ef   : > { %v603_v35 = vadd.f32 %v1043_v34, %v1457_v33  ;;  %v597_v36 = vpop.f32.mrb[1].mxu1 }
 0x1f0   : > { %v598_v37 = vadd.f32 %v1457_v33, %v597_v36 }
 0x1f1   : > { %v872_v38 = vmul.f32 -1.442695, %v603_v35 }
 0x1f2   : > { %v871_v39 = vmul.f32 -1.442695, %v598_v37  ;;  %v1046_v40 = vpop.f32.mrb[2].mxu1 }
 0x1f3   : > { %1201 = vpow2.f32 %v872_v38  ;;  %v613_v41 = vadd.f32 %v1046_v40, %v1457_v33  ;;  %v607_v42 = vpop.f32.mrb[3].mxu1 }
 0x1f4   : > { %1203 = vpow2.f32 %v871_v39  ;;  %v608_v43 = vadd.f32 %v1457_v33, %v607_v42 }
 0x1f5   : > { %v874_v44 = vmul.f32 -1.442695, %v613_v41 }
 0x1f6   : > { %v873_v45 = vmul.f32 -1.442695, %v608_v43  ;;  %v1049_v46 = vpop.f32.mrb[4].mxu1 }
 0x1f7   : > { %1205 = vpow2.f32 %v874_v44  ;;  %v623_v47 = vadd.f32 %v1049_v46, %v1457_v33  ;;  %v617_v48 = vpop.f32.mrb[5].mxu1 }
 0x1f8   : > { %1207 = vpow2.f32 %v873_v45  ;;  %v618_v49 = vadd.f32 %v1457_v33, %v617_v48 }
 0x1f9   : > { %v876_v50 = vmul.f32 -1.442695, %v623_v47 }
 0x1fa   : > { %v875_v51 = vmul.f32 -1.442695, %v618_v49  ;;  %v1052_v52 = vpop.f32.mrb[6].mxu1 }
 0x1fb   : > { %1209 = vpow2.f32 %v876_v50  ;;  %v633_v53 = vadd.f32 %v1052_v52, %v1457_v33  ;;  %v627_v54 = vpop.f32.mrb[7].mxu1 }
 0x1fc   : > { %1211 = vpow2.f32 %v875_v51  ;;  %v628_v55 = vadd.f32 %v1457_v33, %v627_v54 }
 0x1fd   : > { %v1202_v56 = vpop.eup %1201  ;;  %v878_v57 = vmul.f32 -1.442695, %v633_v53 }
 0x1fe   : > { %v1204_v58 = vpop.eup %1203  ;;  %v725_v59 = vadd.f32 1.0, %v1202_v56  ;;  %v877_v60 = vmul.f32 -1.442695, %v628_v55 }
 0x1ff   : > { %v724_v61 = vadd.f32 1.0, %v1204_v58  ;;  %1213 = vpow2.f32 %v878_v57  ;;  %v1055_v62 = vpop.f32.mrb[8].mxu1 }
 0x200   : > { %1215 = vrcp.f32 %v725_v59  ;;  %v643_v63 = vadd.f32 %v1055_v62, %v1457_v33  ;;  %v637_v1 = vpop.f32.mrb[9].mxu1 }
 0x201   : > { %v1206_v2 = vpop.eup %1205  ;;  %1217 = vrcp.f32 %v724_v61  ;;  %v638_v3 = vadd.f32 %v1457_v33, %v637_v1 }
 0x202   : > { %v1208_v4 = vpop.eup %1207  ;;  %v727_v5 = vadd.f32 1.0, %v1206_v2  ;;  %1219 = vpow2.f32 %v877_v60  ;;  %v880_v6 = vmul.f32 -1.442695, %v643_v63 }
 0x203   : > { %v726_v7 = vadd.f32 1.0, %v1208_v4  ;;  %v879_v8 = vmul.f32 -1.442695, %v638_v3  ;;  %v1058_v9 = vpop.f32.mrb[10].mxu1 }
 0x204   : > { %1221 = vrcp.f32 %v727_v5  ;;  %v653_v10 = vadd.f32 %v1058_v9, %v1457_v33  ;;  %v647_v11 = vpop.f32.mrb[11].mxu1 }
 0x205   : > { %v1210_v12 = vpop.eup %1209  ;;  %1223 = vrcp.f32 %v726_v7  ;;  %v648_v0 = vadd.f32 %v1457_v33, %v647_v11 }
 0x206   : > { %v1212_v13 = vpop.eup %1211  ;;  %v729_v14 = vadd.f32 1.0, %v1210_v12  ;;  %1225 = vpow2.f32 %v880_v6  ;;  %v882_v15 = vmul.f32 -1.442695, %v653_v10 }
 0x207   : > { %v728_v16 = vadd.f32 1.0, %v1212_v13  ;;  %1227 = vpow2.f32 %v879_v8  ;;  %v881_v17 = vmul.f32 -1.442695, %v648_v0  ;;  %v1061_v18 = vpop.f32.mrb[12].mxu1 }
 0x208   : > { %1229 = vrcp.f32 %v729_v14  ;;  %v663_v19 = vadd.f32 %v1061_v18, %v1457_v33  ;;  %v657_v20 = vpop.f32.mrb[13].mxu1 }
 0x209   : > { %v1214_v21 = vpop.eup %1213  ;;  %1231 = vrcp.f32 %v728_v16  ;;  %v658_v22 = vadd.f32 %v1457_v33, %v657_v20 }
 0x20a   : > { %v1216_v23 = vpop.eup %1215  ;;  %v731_v24 = vadd.f32 1.0, %v1214_v21  ;;  %1233 = vpow2.f32 %v882_v15  ;;  %v884_v25 = vmul.f32 -1.442695, %v663_v19 }
 0x20b   : > { %v1218_v26 = vpop.eup %1217  ;;  %773 = vst [vmem:[%s1476_s28 + $0x8] sm:$0xff] %v1216_v23  ;;  %1235 = vpow2.f32 %v881_v17  ;;  %v883_v27 = vmul.f32 -1.442695, %v658_v22  ;;  %v1064_v28 = vpop.f32.mrb[14].mxu1 }
 0x20c   : > { %v1220_v29 = vpop.eup %1219  ;;  %772 = vst [vmem:[%s1476_s28] sm:$0xff] %v1218_v26  ;;  %1237 = vrcp.f32 %v731_v24  ;;  %v673_v30 = vadd.f32 %v1064_v28, %v1457_v33  ;;  %v667_v31 = vpop.f32.mrb[15].mxu1 }
 0x20d   : > { %v730_v32 = vadd.f32 1.0, %v1220_v29  ;;  %1239 = vpow2.f32 %v884_v25  ;;  %v668_v34 = vadd.f32 %v1457_v33, %v667_v31 }
 0x20e   : > { %v1222_v35 = vpop.eup %1221  ;;  %1241 = vpow2.f32 %v883_v27  ;;  %v886_v36 = vmul.f32 -1.442695, %v673_v30 }
 0x20f   : > { %v1224_v37 = vpop.eup %1223  ;;  %775 = vst [vmem:[%s1476_s28 + $0x18] sm:$0xff] %v1222_v35  ;;  %1243 = vrcp.f32 %v730_v32  ;;  %v885_v38 = vmul.f32 -1.442695, %v668_v34 }
 0x210   : > { %v1226_v39 = vpop.eup %1225  ;;  %774 = vst [vmem:[%s1476_s28 + $0x10] sm:$0xff] %v1224_v37  ;;  %1245 = vpow2.f32 %v886_v36 }
 0x211   : > { %v1228_v40 = vpop.eup %1227  ;;  %v733_v41 = vadd.f32 1.0, %v1226_v39  ;;  %1247 = vpow2.f32 %v885_v38 }
 0x212   : > { %v1230_v42 = vpop.eup %1229  ;;  %v732_v43 = vadd.f32 1.0, %v1228_v40 }
 0x213   : > { %v1232_v44 = vpop.eup %1231  ;;  %777 = vst [vmem:[%s1476_s28 + $0x28] sm:$0xff] %v1230_v42  ;;  %1249 = vrcp.f32 %v733_v41 }
 0x214   : > { %v1234_v33 = vpop.eup %1233  ;;  %776 = vst [vmem:[%s1476_s28 + $0x20] sm:$0xff] %v1232_v44  ;;  %1251 = vrcp.f32 %v732_v43 }
 0x215   : > { %v1236_v45 = vpop.eup %1235  ;;  %v735_v46 = vadd.f32 1.0, %v1234_v33 }
 0x216   : > { %v1238_v47 = vpop.eup %1237  ;;  %v734_v48 = vadd.f32 1.0, %v1236_v45 }
 0x217   : > { %v1240_v49 = vpop.eup %1239  ;;  %779 = vst [vmem:[%s1476_s28 + $0x38] sm:$0xff] %v1238_v47  ;;  %1253 = vrcp.f32 %v735_v46 }
 0x218   : > { %v1242_v50 = vpop.eup %1241  ;;  %1255 = vrcp.f32 %v734_v48  ;;  %v737_v51 = vadd.f32 1.0, %v1240_v49 }
 0x219   : > { %v1244_v52 = vpop.eup %1243  ;;  %v736_v53 = vadd.f32 1.0, %v1242_v50 }
 0x21a   : > { %v1246_v54 = vpop.eup %1245  ;;  %778 = vst [vmem:[%s1476_s28 + $0x30] sm:$0xff] %v1244_v52  ;;  %1257 = vrcp.f32 %v737_v51 }
 0x21b   : > { %v1248_v55 = vpop.eup %1247  ;;  %1259 = vrcp.f32 %v736_v53  ;;  %v739_v56 = vadd.f32 1.0, %v1246_v54 }
 0x21c   : > { %v738_v57 = vadd.f32 1.0, %v1248_v55 }
 0x21d   : > { %v1250_v58 = vpop.eup %1249  ;;  %1261 = vrcp.f32 %v739_v56 }
 0x21e   : > { %v1252_v59 = vpop.eup %1251  ;;  %781 = vst [vmem:[%s1476_s28 + $0x48] sm:$0xff] %v1250_v58  ;;  %1263 = vrcp.f32 %v738_v57 }
 0x21f   : > { %780 = vst [vmem:[%s1476_s28 + $0x40] sm:$0xff] %v1252_v59 }
 0x221   : > { %v1254_v60 = vpop.eup %1253 }
 0x222   : > { %v1256_v61 = vpop.eup %1255  ;;  %783 = vst [vmem:[%s1476_s28 + $0x58] sm:$0xff] %v1254_v60 }
 0x223   : > { %782 = vst [vmem:[%s1476_s28 + $0x50] sm:$0xff] %v1256_v61 }
 0x224   : > { %v1258_v62 = vpop.eup %1257 }
 0x225   : > { %v1260_v63 = vpop.eup %1259  ;;  %785 = vst [vmem:[%s1476_s28 + $0x68] sm:$0xff] %v1258_v62 }
 0x226   : > { %784 = vst [vmem:[%s1476_s28 + $0x60] sm:$0xff] %v1260_v63 }
 0x227   : > { %v1262_v1 = vpop.eup %1261 }
 0x228   : > { %v1264_v2 = vpop.eup %1263  ;;  %787 = vst [vmem:[%s1476_s28 + $0x78] sm:$0xff] %v1262_v1 }
 0x229   : > { %786 = vst [vmem:[%s1476_s28 + $0x70] sm:$0xff] %v1264_v2 }
 0x22a PF: > { %s15_s18 = sadd.s32 1, %s1271_s18  }
 0x22b   : > { %p12_p4 = scmp.ge.s32.totalorder %s15_s18, 6  }
 0x22d   :  { %14 = sbr.rel (!%p12_p4) target bundleno = 1 (0x1), region = 70 }

</bundles_post_ra>
